<compile_context>
chip_gen: v7x
topology: tpu7x:2x2x1
jax: 0.10.0
libtpu: 0.0.40
codegen_flags: <defaults>
</compile_context>

<pallas_src>
import functools

import jax
import jax.numpy as jnp
from jax.experimental import pallas as pl
from jax.experimental.pallas import tpu as pltpu

LN_EPS = 0.1          # module's `eps` argument, interpreted as LayerNorm epsilon
DROPOUT_RATE = 0.1    # module's dropout_rate

_VMEM_LIMIT_BYTES = 48 << 20   # safe on v5e/v6e (128 MiB) and v7x (64 MiB/TC)
_TILE_BUDGET_BYTES = 24 << 20  # ~8x (block_rows, H_pad) f32 tiles live at once


def _choose_block_rows(n_rows, h_pad, requested):
    """Largest row tile that keeps the double-buffered working set in budget."""
    max_rows = _TILE_BUDGET_BYTES // (8 * h_pad * 4)
    br = requested if requested is not None else 512
    br = min(br, max_rows, ((n_rows + 7) // 8) * 8)
    br = max(8, (br // 8) * 8)
    return int(br)


def _layernorm_rows(s, g, b, h_true, eps):
    # Single-pass mean / variance over the true hidden width.
    # Padded columns of `s` are exactly zero, so plain sums are correct.
    inv_h = jnp.float32(1.0 / h_true)
    mean = jnp.sum(s, axis=-1, keepdims=True) * inv_h
    ex2 = jnp.sum(s * s, axis=-1, keepdims=True) * inv_h
    var = jnp.maximum(ex2 - mean * mean, jnp.float32(0.0))
    norm = (s - mean) * jax.lax.rsqrt(var + jnp.float32(eps))
    return norm * g + b


def _residual_ln_kernel(x_ref, y_ref, g_ref, b_ref, o_ref, *, eps, h_true):
    # inference path: out = LayerNorm(x + y)
    s = x_ref[...].astype(jnp.float32) + y_ref[...].astype(jnp.float32)
    out = _layernorm_rows(s, g_ref[...].astype(jnp.float32),
                          b_ref[...].astype(jnp.float32), h_true, eps)
    o_ref[...] = out.astype(o_ref.dtype)


def _residual_dropout_ln_kernel(seed_ref, x_ref, y_ref, g_ref, b_ref, o_ref,
                                *, eps, rate, h_true, h_pad, block_rows):
    # training path: out = LayerNorm(x + dropout(y))
    x = x_ref[...].astype(jnp.float32)
    y = y_ref[...].astype(jnp.float32)

    # Stateless, tiling-invariant per-element uniform bits from an integer
    # hash of the absolute element index and the seed ("lowbias32" mixer).
    rows = jax.lax.broadcasted_iota(jnp.int32, y.shape, 0).astype(jnp.uint32)
    cols = jax.lax.broadcasted_iota(jnp.int32, y.shape, 1).astype(jnp.uint32)
    base = (pl.program_id(0) * block_rows).astype(jnp.uint32)
    idx = (rows + base) * jnp.uint32(h_pad) + cols
    h = idx ^ (seed_ref[0].astype(jnp.uint32) * jnp.uint32(0x9E3779B9))
    h = h ^ (h >> jnp.uint32(16))
    h = h * jnp.uint32(0x7FEB352D)
    h = h ^ (h >> jnp.uint32(15))
    h = h * jnp.uint32(0x846CA68B)
    h = h ^ (h >> jnp.uint32(16))

    # keep iff top-24-bit uniform >= rate * 2^24; fold mask, scale and cast
    # into a single select.
    thresh = jnp.uint32(int(rate * (1 << 24)))
    keep = (h >> jnp.uint32(8)) >= thresh
    scale = jnp.float32(1.0 / (1.0 - rate))
    y = jnp.where(keep, y * scale, jnp.float32(0.0))

    s = x + y
    out = _layernorm_rows(s, g_ref[...].astype(jnp.float32),
                          b_ref[...].astype(jnp.float32), h_true, eps)
    o_ref[...] = out.astype(o_ref.dtype)


def residual_connection(initial_input, previous_output, gamma, beta, *,
                        training=False, dropout_rate=DROPOUT_RATE,
                        eps=LN_EPS, seed=0, block_rows=None):
    """Pallas implementation of ResidualConnection.forward."""
    orig_shape = initial_input.shape
    H = orig_shape[-1]
    x = initial_input.reshape(-1, H)
    y = previous_output.reshape(-1, H)
    R = x.shape[0]

    # Lane-dense hidden axis and VMEM-budgeted row tile.
    H_pad = max(128, ((H + 127) // 128) * 128)
    br = _choose_block_rows(R, H_pad, block_rows)
    R_pad = ((R + br - 1) // br) * br

    pad_r, pad_c = R_pad - R, H_pad - H
    if pad_r or pad_c:
        x = jnp.pad(x, ((0, pad_r), (0, pad_c)))
        y = jnp.pad(y, ((0, pad_r), (0, pad_c)))
    g2 = jnp.pad(gamma.astype(jnp.float32).reshape(1, H), ((0, 0), (0, pad_c)))
    b2 = jnp.pad(beta.astype(jnp.float32).reshape(1, H), ((0, 0), (0, pad_c)))

    grid = (R_pad // br,)
    row_spec = pl.BlockSpec((br, H_pad), lambda i, *_: (i, 0))
    par_spec = pl.BlockSpec((1, H_pad), lambda i, *_: (0, 0))
    out_shape = jax.ShapeDtypeStruct((R_pad, H_pad), initial_input.dtype)
    cparams = pltpu.CompilerParams(
        dimension_semantics=("parallel",),      # independent row blocks
        vmem_limit_bytes=_VMEM_LIMIT_BYTES)

    if training:
        kernel = functools.partial(
            _residual_dropout_ln_kernel, eps=eps, rate=dropout_rate,
            h_true=H, h_pad=H_pad, block_rows=br)
        grid_spec = pltpu.PrefetchScalarGridSpec(
            num_scalar_prefetch=1, grid=grid,
            in_specs=[row_spec, row_spec, par_spec, par_spec],
            out_specs=row_spec)
        out = pl.pallas_call(
            kernel, out_shape=out_shape, grid_spec=grid_spec,
            compiler_params=cparams,
        )(jnp.asarray([seed], jnp.int32), x, y, g2, b2)
    else:
        kernel = functools.partial(_residual_ln_kernel, eps=eps, h_true=H)
        grid_spec = pltpu.PrefetchScalarGridSpec(
            num_scalar_prefetch=0, grid=grid,
            in_specs=[row_spec, row_spec, par_spec, par_spec],
            out_specs=row_spec)
        out = pl.pallas_call(
            kernel, out_shape=out_shape, grid_spec=grid_spec,
            compiler_params=cparams,
        )(x, y, g2, b2)

    return out[:R, :H].reshape(orig_shape)


if __name__ == "__main__":
    key = jax.random.PRNGKey(0)
    B, S, H = 2, 8, 32
    k1, k2 = jax.random.split(key)
    x = jax.random.normal(k1, (B, S, H), jnp.float32)
    y = jax.random.normal(k2, (B, S, H), jnp.float32)

    # Deterministic LayerNorm parameter init (PyTorch default: weight=1, bias=0)
    gamma = jnp.ones((H,), jnp.float32)
    beta = jnp.zeros((H,), jnp.float32)

    # Inference path (forward default: training=False)
    out = jax.block_until_ready(
        residual_connection(x, y, gamma, beta, training=False))

    # Pure-JAX reference check for the inference path
    s = x + y
    mean = s.mean(-1, keepdims=True)
    var = ((s - mean) ** 2).mean(-1, keepdims=True)
    ref = (s - mean) / jnp.sqrt(var + LN_EPS) * gamma + beta
    assert out.shape == x.shape and out.dtype == x.dtype
    assert jnp.allclose(out, ref, atol=1e-5, rtol=1e-5), "mismatch vs reference"

    # Training path: dropout uses a stateless in-kernel hash (RNG stream
    # differs from torch; semantics — zero w.p. p, scale by 1/(1-p) — match).
    out_tr = jax.block_until_ready(
        residual_connection(x, y, gamma, beta, training=True, seed=123))
    assert out_tr.shape == x.shape
    assert bool(jnp.all(jnp.isfinite(out_tr)))

    print("KERNEL_OK")
</pallas_src>

<mosaic_0001>
module attributes {stable_mosaic.version = 11 : i64} {
  func.func @_residual_ln_kernel(%arg0: i32, %arg1: memref<16x128xf32, #tpu.memory_space<vmem>>, %arg2: memref<16x128xf32, #tpu.memory_space<vmem>>, %arg3: memref<1x128xf32, #tpu.memory_space<vmem>>, %arg4: memref<1x128xf32, #tpu.memory_space<vmem>>, %arg5: memref<16x128xf32, #tpu.memory_space<vmem>>) attributes {dimension_semantics = [#tpu.dimension_semantics<parallel>], iteration_bounds = array<i64: 1>, scalar_prefetch = 0 : i64, scratch_operands = 0 : i64, tpu.core_type = #tpu.core_type<tc>, window_params = [{transform_indices = @transform_0, window_bounds = array<i64: 16, 128>}, {transform_indices = @transform_1, window_bounds = array<i64: 16, 128>}, {pipeline_mode = #tpu.pipeline_mode<synchronous>, transform_indices = @transform_2, window_bounds = array<i64: 1, 128>}, {pipeline_mode = #tpu.pipeline_mode<synchronous>, transform_indices = @transform_3, window_bounds = array<i64: 1, 128>}, {transform_indices = @transform_4, window_bounds = array<i64: 16, 128>}]} {
    %c0 = arith.constant 0 : index
    %c0_0 = arith.constant 0 : index
    %0 = vector.load %arg1[%c0, %c0_0] : memref<16x128xf32, #tpu.memory_space<vmem>>, vector<16x128xf32>
    %c0_1 = arith.constant 0 : index
    %c0_2 = arith.constant 0 : index
    %1 = vector.load %arg2[%c0_1, %c0_2] : memref<16x128xf32, #tpu.memory_space<vmem>>, vector<16x128xf32>
    %2 = arith.addf %0, %1 : vector<16x128xf32>
    %c0_3 = arith.constant 0 : index
    %c0_4 = arith.constant 0 : index
    %3 = vector.load %arg3[%c0_3, %c0_4] : memref<1x128xf32, #tpu.memory_space<vmem>>, vector<1x128xf32>
    %c0_5 = arith.constant 0 : index
    %c0_6 = arith.constant 0 : index
    %4 = vector.load %arg4[%c0_5, %c0_6] : memref<1x128xf32, #tpu.memory_space<vmem>>, vector<1x128xf32>
    %cst = arith.constant dense<0.000000e+00> : vector<16xf32>
    %5 = vector.multi_reduction <add>, %2, %cst [1] : vector<16x128xf32> to vector<16xf32>
    %6 = vector.shape_cast %5 : vector<16xf32> to vector<16x1xf32>
    %cst_7 = arith.constant 3.125000e-02 : f32
    %7 = vector.broadcast %cst_7 : f32 to vector<16x1xf32>
    %8 = arith.mulf %6, %7 : vector<16x1xf32>
    %9 = arith.mulf %2, %2 : vector<16x128xf32>
    %cst_8 = arith.constant dense<0.000000e+00> : vector<16xf32>
    %10 = vector.multi_reduction <add>, %9, %cst_8 [1] : vector<16x128xf32> to vector<16xf32>
    %11 = vector.shape_cast %10 : vector<16xf32> to vector<16x1xf32>
    %cst_9 = arith.constant 3.125000e-02 : f32
    %12 = vector.broadcast %cst_9 : f32 to vector<16x1xf32>
    %13 = arith.mulf %11, %12 : vector<16x1xf32>
    %14 = arith.mulf %8, %8 : vector<16x1xf32>
    %15 = arith.subf %13, %14 : vector<16x1xf32>
    %cst_10 = arith.constant 0.000000e+00 : f32
    %16 = vector.broadcast %cst_10 : f32 to vector<16x1xf32>
    %17 = arith.maximumf %15, %16 : vector<16x1xf32>
    %18 = vector.broadcast %8 : vector<16x1xf32> to vector<16x128xf32>
    %19 = arith.subf %2, %18 : vector<16x128xf32>
    %cst_11 = arith.constant 1.000000e-01 : f32
    %20 = vector.broadcast %cst_11 : f32 to vector<16x1xf32>
    %21 = arith.addf %17, %20 : vector<16x1xf32>
    %22 = math.rsqrt %21 : vector<16x1xf32>
    %23 = vector.broadcast %22 : vector<16x1xf32> to vector<16x128xf32>
    %24 = arith.mulf %19, %23 : vector<16x128xf32>
    %25 = vector.broadcast %3 : vector<1x128xf32> to vector<16x128xf32>
    %26 = arith.mulf %24, %25 : vector<16x128xf32>
    %27 = vector.broadcast %4 : vector<1x128xf32> to vector<16x128xf32>
    %28 = arith.addf %26, %27 : vector<16x128xf32>
    %c0_12 = arith.constant 0 : index
    %c0_13 = arith.constant 0 : index
    %29 = vector.load %arg5[%c0_12, %c0_13] : memref<16x128xf32, #tpu.memory_space<vmem>>, vector<16x128xf32>
    tpu.vector_store %arg5[%c0_12, %c0_13], %28 {strides = array<i32>} : memref<16x128xf32, #tpu.memory_space<vmem>>, vector<16x128xf32>,
    return
  }
  func.func @transform_0(%arg0: i32) -> (i32, i32) {
    %c0_i32 = arith.constant 0 : i32
    %c0_i32_0 = arith.constant 0 : i32
    return %arg0, %c0_i32 : i32, i32
  }
  func.func @transform_1(%arg0: i32) -> (i32, i32) {
    %c0_i32 = arith.constant 0 : i32
    %c0_i32_0 = arith.constant 0 : i32
    return %arg0, %c0_i32 : i32, i32
  }
  func.func @transform_2(%arg0: i32) -> (i32, i32) {
    %c0_i32 = arith.constant 0 : i32
    %c0_i32_0 = arith.constant 0 : i32
    %c0_i32_1 = arith.constant 0 : i32
    return %c0_i32, %c0_i32_0 : i32, i32
  }
  func.func @transform_3(%arg0: i32) -> (i32, i32) {
    %c0_i32 = arith.constant 0 : i32
    %c0_i32_0 = arith.constant 0 : i32
    %c0_i32_1 = arith.constant 0 : i32
    return %c0_i32, %c0_i32_0 : i32, i32
  }
  func.func @transform_4(%arg0: i32) -> (i32, i32) {
    %c0_i32 = arith.constant 0 : i32
    %c0_i32_0 = arith.constant 0 : i32
    return %arg0, %c0_i32 : i32, i32
  }
}

</mosaic_0001>

<bundles_post_ra>
// kernel: tpu_custom_call.1
= control target key start
LH: loop header
LB: loop body
LE: loop exit
PB: predicated region body
PF: predicated region fallthrough
CT: control target
= control target key end

     0   :  { %9 = vsyncpa [#allocation3], 0  ;;  %s282_s0 = inlined_call_operand.hbm [shape: f32[16,128], index: 0, kind: input, shape index: {}]   ;;  %s283_s1 = inlined_call_operand.hbm [shape: f32[16,128], index: 1, kind: input, shape index: {}]   ;;  %s284_s2 = inlined_call_operand.vmem [shape: f32[1,128], index: 2, kind: input, shape index: {}]   ;;  %s285_s3 = inlined_call_operand.vmem [shape: f32[1,128], index: 3, kind: input, shape index: {}]   ;;  %s286_s4 = inlined_call_operand.hbm [shape: f32[16,128], index: 4, kind: output, shape index: {}]  }
   0x1   :  { %10 = vsyncpa [#allocation6], 0 }
   0x2   :  { %11 = vsyncpa [#allocation4], 0  ;;  %s201_s15 = smov [#allocation2]   ;;  %s129_s19 = scalar_lea.hbm %s282_s0, 256 }
   0x3   :  { %s17_s16 = sshll.u32 %s201_s15, 4  ;;  %p130_p0 = scmp.ne.s32.totalorder %s282_s0, %s129_s19  ;;  %s18_s16 = int_to_ptr.vmem [resolvable:$true] %s17_s16 }
   0x4   :  { %p133_p1 = scmp.lt.u32.totalorder %s129_s19, %s282_s0 }
   0x6   :  { %p135_p2 = pnand %p133_p1, %p130_p0 }
   0x8   :  { %138 = shalt.err (!%p135_p2)
}
   0x9   :  { %s139_s24 = scalar_lea.vmem %s18_s16, 256  ;;  %p144_p4 = scmp.lt.s32.totalorder %s18_s16, %s18_s16 }
   0xa   :  { %p140_p3 = scmp.ne.s32.totalorder %s18_s16, %s139_s24  ;;  %p145_p5 = scmp.lt.s32.totalorder %s139_s24, %s139_s24 }
   0xc   :  { %p146_p6 = por %p145_p5, %p144_p4 }
   0xe   :  { %p147_p7 = pnand %p146_p6, %p140_p3 }
  0x10   :  { %150 = shalt.err (!%p147_p7)
}
  0x11   :  { %s202_s25 = smov 128   ;;  %s203_s26 = smov 8  }
  0x12   :  { %23 = dma.hbm_to_vmem [thread:$0]  %s282_s0, 256, %s18_s16, [#allocation3], %s202_s25, %s202_s25, %s203_s26  }
  0x13   :  { %s204_s29 = smov [#allocation5]   ;;  %s151_s7 = scalar_lea.hbm %s283_s1, 256 }
  0x14   :  { %s29_s30 = sshll.u32 %s204_s29, 4  ;;  %p152_p8 = scmp.ne.s32.totalorder %s283_s1, %s151_s7  ;;  %s30_s30 = int_to_ptr.vmem [resolvable:$true] %s29_s30 }
  0x15   :  { %p155_p9 = scmp.lt.u32.totalorder %s151_s7, %s283_s1 }
  0x17   :  { %p157_p10 = pnand %p155_p9, %p152_p8 }
  0x19   :  { %160 = shalt.err (!%p157_p10)
}
  0x1a   :  { %s161_s12 = scalar_lea.vmem %s30_s30, 256  ;;  %p166_p12 = scmp.lt.s32.totalorder %s30_s30, %s30_s30 }
  0x1b   :  { %p162_p11 = scmp.ne.s32.totalorder %s30_s30, %s161_s12  ;;  %p167_p13 = scmp.lt.s32.totalorder %s161_s12, %s161_s12 }
  0x1d   :  { %p168_p0 = por %p167_p13, %p166_p12 }
  0x1f   :  { %p169_p1 = pnand %p168_p0, %p162_p11 }
  0x21   :  { %172 = shalt.err (!%p169_p1)
}
  0x22   :  { %35 = dma.hbm_to_vmem [thread:$0]  %s283_s1, 256, %s30_s30, [#allocation6], %s202_s25, %s202_s25, %s203_s26  }
  0x23   :  { %195 = dma.done.wait [#allocation3], 256  }
  0x24   :  { %196 = vsyncadd [#allocation3], 4294967040 }
  0x25   :  { %197 = dma.done.wait [#allocation6], 256  }
  0x26   :  { %198 = vsyncadd [#allocation6], 4294967040  ;;  %v46_v0 = vld [vmem:[#allocation2] sm:$0xff]  ;;  %v48_v1 = vld [vmem:[#allocation5] sm:$0xff]  ;;  %s205_s17 = smov [#allocation7]  }
  0x27   :  { %v47_v2 = vld [vmem:[#allocation2 + $0x8] sm:$0xff]  ;;  %v50_v3 = vadd.f32 %v48_v1, %v46_v0  ;;  %v49_v4 = vld [vmem:[#allocation5 + $0x8] sm:$0xff]  ;;  %v118_v26 = vld [vmem:[%s284_s2] ss:$0 sm:$0xff]  ;;  %s105_s18 = sshll.u32 %s205_s17, 4  ;;  %s106_s18 = int_to_ptr.vmem [resolvable:$true] %s105_s18 }
  0x28   :  { %v51_v5 = vadd.f32 %v49_v4, %v47_v2  ;;  %v119_v28 = vld [vmem:[%s285_s3] ss:$0 sm:$0xff]  ;;  %s173_s19 = scalar_lea.vmem %s106_s18, 256  ;;  %p178_p3 = scmp.lt.s32.totalorder %s106_s18, %s106_s18 }
  0x29   :  { %54 = vadd.xlane.f32.xlu0 %v50_v3  ;;  %v60_v6 = vmul.f32 %v50_v3, %v50_v3  ;;  %p174_p2 = scmp.ne.s32.totalorder %s106_s18, %s173_s19  ;;  %p179_p4 = scmp.lt.s32.totalorder %s173_s19, %s173_s19 }
  0x2a   :  { %v61_v7 = vmul.f32 %v51_v5, %v51_v5 }
  0x2b   :  { %62 = vadd.xlane.f32.xlu1 %v60_v6  ;;  %p180_p5 = por %p179_p4, %p178_p3 }
  0x2d   :  { %56 = vadd.xlane.f32.xlu0 %v51_v5  ;;  %p181_p6 = pnand %p180_p5, %p174_p2 }
  0x2f   :  { %64 = vadd.xlane.f32.xlu1 %v61_v7 }
  0xb6   :  { %v55_v8 = vpop.xlane.xlu0 %54 }
  0xb7   :  { %v58_v9 = vmul.f32 0.03125, %v55_v8 }
  0xb8   :  { %v63_v10 = vpop.xlane.xlu1 %62 }
  0xb9   :  { %v68_v11 = vmul.f32 %v58_v9, %v58_v9  ;;  %v66_v12 = vmul.f32 0.03125, %v63_v10  ;;  %v74_v24 = vsub.f32 %v50_v3, %v58_v9 }
  0xba   :  { %v57_v13 = vpop.xlane.xlu0 %56 }
  0xbb   :  { %v70_v14 = vsub.f32 %v66_v12, %v68_v11  ;;  %v59_v15 = vmul.f32 0.03125, %v57_v13 }
  0xbc   :  { %v65_v16 = vpop.xlane.xlu1 %64 }
  0xbd   :  { %v72_v17 = vmax.f32 %v70_v14, 0.0  ;;  %v69_v18 = vmul.f32 %v59_v15, %v59_v15  ;;  %v67_v19 = vmul.f32 0.03125, %v65_v16  ;;  %v75_v29 = vsub.f32 %v51_v5, %v59_v15 }
  0xbf   :  { %v76_v20 = vadd.f32 0.1, %v72_v17  ;;  %v71_v21 = vsub.f32 %v67_v19, %v69_v18 }
  0xc1   :  { %125 = vrsqrt.f32 %v76_v20  ;;  %v73_v22 = vmax.f32 %v71_v21, 0.0 }
  0xc3   :  { %v77_v23 = vadd.f32 0.1, %v73_v22 }
  0xc5   :  { %127 = vrsqrt.f32 %v77_v23 }
  0xcb   :  { %v126_v25 = vpop.eup %125 }
  0xcc   :  { %v80_v27 = vmul.f32 %v126_v25, %v74_v24 }
  0xce   :  { %v88_v30 = vmul.f32 %v118_v26, %v80_v27 }
  0xcf   :  { %v128_v31 = vpop.eup %127 }
  0xd0   :  { %v81_v32 = vmul.f32 %v128_v31, %v75_v29  ;;  %v96_v33 = vadd.f32 %v119_v28, %v88_v30 }
  0xd2   :  { %v89_v34 = vmul.f32 %v118_v26, %v81_v32  ;;  %98 = vst [vmem:[#allocation7] sm:$0xff] %v96_v33 }
  0xd4   :  { %v97_v35 = vadd.f32 %v119_v28, %v89_v34 }
  0xd6   :  { %99 = vst [vmem:[#allocation7 + $0x8] sm:$0xff] %v97_v35 }
  0xd7   :  { %184 = shalt.err (!%p181_p6)
}
  0xd8   :  { %s185_s20 = scalar_lea.hbm %s286_s4, 256 }
  0xd9   :  { %p186_p7 = scmp.ne.s32.totalorder %s286_s4, %s185_s20  ;;  %p189_p8 = scmp.lt.u32.totalorder %s185_s20, %s286_s4 }
  0xdb   :  { %p191_p9 = pnand %p189_p8, %p186_p7 }
  0xdd   :  { %194 = shalt.err (!%p191_p9)
}
  0xde   :  { %111 = dma.vmem_to_hbm [thread:$0]  %s106_s18, 256, %s286_s4, [#allocation4], %s202_s25, %s202_s25, %s203_s26  }
  0xdf   :  { %199 = dma.done.wait [#allocation4], 256  }
  0xe0   :  { %200 = vsyncadd [#allocation4], 4294967040 }
  0xe1   :  { %115 = vsyncpa [#allocation3], 1 }
  0xe2   :  { %116 = vsyncpa [#allocation6], 1 }
  0xe3   :  { %117 = vsyncpa [#allocation4], 1 }

</bundles_post_ra>
